<compile_context>
chip_gen: v5e
topology: v5e:2x2
jax: 0.10.0
libtpu: 0.0.40
codegen_flags: <defaults>
</compile_context>

<pallas_src>
import jax
import jax.numpy as jnp
from jax.experimental import pallas as pl
from jax.experimental.pallas import tpu as pltpu

_EPS = 1e-05
_LANES = 128


# ---------------------------------------------------------------------------
# Kernels: regular path (one row per sublane, H on the lane axis)
# ---------------------------------------------------------------------------
def _ln_kernel_bias(x_ref, w_ref, b_ref, o_ref):
    x = x_ref[...].astype(jnp.float32)
    mean = jnp.mean(x, axis=-1, keepdims=True)
    meansq = jnp.mean(x * x, axis=-1, keepdims=True)
    var = jnp.maximum(meansq - mean * mean, 0.0)   # biased variance, clamped
    inv = jax.lax.rsqrt(var + _EPS)
    o_ref[...] = ((x - mean) * inv * w_ref[...] + b_ref[...]).astype(o_ref.dtype)


def _ln_kernel_nobias(x_ref, w_ref, o_ref):
    x = x_ref[...].astype(jnp.float32)
    mean = jnp.mean(x, axis=-1, keepdims=True)
    meansq = jnp.mean(x * x, axis=-1, keepdims=True)
    var = jnp.maximum(meansq - mean * mean, 0.0)
    inv = jax.lax.rsqrt(var + _EPS)
    o_ref[...] = ((x - mean) * inv * w_ref[...]).astype(o_ref.dtype)


# ---------------------------------------------------------------------------
# Kernels: lane-dense small-H path.  x_ref is (tile, 128) holding k = 128/H
# rows per folded row.  m_ref is a (128, 128) block-diagonal averaging matrix
# (1/H within a segment), so x @ m broadcasts each segment's mean back to its
# own lanes in a single MXU op; the MXU is otherwise idle in this kernel.
# ---------------------------------------------------------------------------
def _ln_kernel_folded_bias(x_ref, m_ref, w_ref, b_ref, o_ref):
    x = x_ref[...].astype(jnp.float32)
    seg_avg = m_ref[...]
    mean = jnp.dot(x, seg_avg, preferred_element_type=jnp.float32)
    meansq = jnp.dot(x * x, seg_avg, preferred_element_type=jnp.float32)
    var = jnp.maximum(meansq - mean * mean, 0.0)
    inv = jax.lax.rsqrt(var + _EPS)
    o_ref[...] = ((x - mean) * inv * w_ref[...] + b_ref[...]).astype(o_ref.dtype)


def _ln_kernel_folded_nobias(x_ref, m_ref, w_ref, o_ref):
    x = x_ref[...].astype(jnp.float32)
    seg_avg = m_ref[...]
    mean = jnp.dot(x, seg_avg, preferred_element_type=jnp.float32)
    meansq = jnp.dot(x * x, seg_avg, preferred_element_type=jnp.float32)
    var = jnp.maximum(meansq - mean * mean, 0.0)
    inv = jax.lax.rsqrt(var + _EPS)
    o_ref[...] = ((x - mean) * inv * w_ref[...]).astype(o_ref.dtype)


# ---------------------------------------------------------------------------
# Tiling heuristics
# ---------------------------------------------------------------------------
def _round_up(v, m):
    return ((v + m - 1) // m) * m


def _row_align(dtype):
    """Sublane packing: 8 rows for 4-byte, 16 for 2-byte, 32 for 1-byte dtypes."""
    itemsize = jnp.dtype(dtype).itemsize
    return 8 * max(1, 4 // max(1, itemsize))


def _tpu_params():
    """(per-core VMEM bytes, looks-like-2-TensorCore-chip).  Conservative fallback."""
    vmem_cap = 64 * 1024 * 1024
    two_tc = False
    try:
        info = pltpu.get_tpu_info()
        vmem_cap = int(getattr(info, "vmem_capacity_bytes", vmem_cap))
        # v7x-class parts have 64 MiB per-TC VMEM and 2 TensorCores per chip;
        # 128-MiB parts (v5e/v6e) have a single TC.
        two_tc = vmem_cap <= 64 * 1024 * 1024
    except Exception:
        pass
    return vmem_cap, two_tc


def _vmem_limit(vmem_cap):
    return int(max(32 * 1024 * 1024, min(0.75 * vmem_cap, 100 * 1024 * 1024)))


def _pick_tile_rows(rows, feat, itemsize, align, vmem_cap, two_tc):
    """Row-tile targeting ~4 MiB input blocks, capped by a generation-aware
    VMEM budget, shrunk only as far as needed for pipelining / 2-TC split."""
    row_bytes = max(1, feat * itemsize)
    rows_aligned = _round_up(rows, align)

    # VMEM per tile-row: double-buffered in + out, plus ~2 f32-wide live temps.
    per_row_vmem = 4 * row_bytes + 2 * feat * 4
    budget = max(8 * 1024 * 1024, int(0.45 * vmem_cap))
    vmem_rows = max(align, budget // per_row_vmem)

    target_rows = max(align, (4 * 1024 * 1024) // row_bytes)   # ~4 MiB blocks
    floor_rows = max(align, (512 * 1024) // row_bytes)         # >= ~512 KiB blocks

    tile = min(target_rows, vmem_rows, rows_aligned)

    # Keep >=2 pipelined steps (>=4 when 2 TCs share the parallel axis), but
    # never shrink blocks below the ~512 KiB floor, and only when there is
    # enough data for overlap to matter.
    min_steps = 4 if two_tc else 2
    total_bytes = rows * row_bytes
    if total_bytes >= 2 * min_steps * 512 * 1024:
        cap = _round_up(pl.cdiv(rows, min_steps), align)
        tile = min(tile, max(cap, floor_rows))

    tile = max(align, (tile // align) * align)
    tile = min(tile, rows_aligned)

    # 2-TC chips: nudge toward an even grid-step count so neither TC idles.
    if two_tc:
        steps = pl.cdiv(rows, tile)
        if steps > 1 and steps % 2 == 1:
            tile = max(align, _round_up(pl.cdiv(rows, steps + 1), align))
            tile = min(tile, rows_aligned)
    return tile


# ---------------------------------------------------------------------------
# Wrappers
# ---------------------------------------------------------------------------
def _layer_norm_rows(x2, w_f32, b_f32, rows, H):
    vmem_cap, two_tc = _tpu_params()
    align = _row_align(x2.dtype)
    itemsize = jnp.dtype(x2.dtype).itemsize
    tile = _pick_tile_rows(rows, H, itemsize, align, vmem_cap, two_tc)
    grid = (pl.cdiv(rows, tile),)   # ragged last block handled by Pallas

    x_spec = pl.BlockSpec((tile, H), lambda i: (i, 0))
    vec_spec = pl.BlockSpec((1, H), lambda i: (0, 0))
    o_spec = pl.BlockSpec((tile, H), lambda i: (i, 0))
    cp = pltpu.CompilerParams(
        dimension_semantics=("parallel",),
        vmem_limit_bytes=_vmem_limit(vmem_cap),
    )
    out_shape = jax.ShapeDtypeStruct((rows, H), x2.dtype)

    if b_f32 is not None:
        return pl.pallas_call(
            _ln_kernel_bias,
            out_shape=out_shape,
            grid_spec=pltpu.PrefetchScalarGridSpec(
                num_scalar_prefetch=0, grid=grid,
                in_specs=[x_spec, vec_spec, vec_spec], out_specs=o_spec),
            compiler_params=cp,
        )(x2, w_f32.reshape(1, H), b_f32.reshape(1, H))
    return pl.pallas_call(
        _ln_kernel_nobias,
        out_shape=out_shape,
        grid_spec=pltpu.PrefetchScalarGridSpec(
            num_scalar_prefetch=0, grid=grid,
            in_specs=[x_spec, vec_spec], out_specs=o_spec),
        compiler_params=cp,
    )(x2, w_f32.reshape(1, H))


def _layer_norm_folded(x2, w_f32, b_f32, rows, H, fold):
    F = fold * H            # == 128
    rows_f = rows // fold
    xf = x2.reshape(rows_f, F)

    # Block-diagonal averaging matrix: M[l, l'] = 1/H if l//H == l'//H else 0.
    seg = jnp.arange(F, dtype=jnp.int32) // H
    seg_avg = (seg[:, None] == seg[None, :]).astype(jnp.float32) / float(H)
    w_t = jnp.tile(w_f32, fold).reshape(1, F)
    b_t = jnp.tile(b_f32, fold).reshape(1, F) if b_f32 is not None else None

    vmem_cap, two_tc = _tpu_params()
    align = _row_align(x2.dtype)
    itemsize = jnp.dtype(x2.dtype).itemsize
    tile = _pick_tile_rows(rows_f, F, itemsize, align, vmem_cap, two_tc)
    grid = (pl.cdiv(rows_f, tile),)

    x_spec = pl.BlockSpec((tile, F), lambda i: (i, 0))
    m_spec = pl.BlockSpec((F, F), lambda i: (0, 0))
    vec_spec = pl.BlockSpec((1, F), lambda i: (0, 0))
    o_spec = pl.BlockSpec((tile, F), lambda i: (i, 0))
    cp = pltpu.CompilerParams(
        dimension_semantics=("parallel",),
        vmem_limit_bytes=_vmem_limit(vmem_cap),
    )
    out_shape = jax.ShapeDtypeStruct((rows_f, F), x2.dtype)

    if b_t is not None:
        out = pl.pallas_call(
            _ln_kernel_folded_bias,
            out_shape=out_shape,
            grid_spec=pltpu.PrefetchScalarGridSpec(
                num_scalar_prefetch=0, grid=grid,
                in_specs=[x_spec, m_spec, vec_spec, vec_spec], out_specs=o_spec),
            compiler_params=cp,
        )(xf, seg_avg, w_t, b_t)
    else:
        out = pl.pallas_call(
            _ln_kernel_folded_nobias,
            out_shape=out_shape,
            grid_spec=pltpu.PrefetchScalarGridSpec(
                num_scalar_prefetch=0, grid=grid,
                in_specs=[x_spec, m_spec, vec_spec], out_specs=o_spec),
            compiler_params=cp,
        )(xf, seg_avg, w_t)
    return out.reshape(rows, H)


def layer_norm(x, weight, bias=None):
    """LayerNorm over the last dim of x. weight/bias have shape (H,)."""
    orig_shape = x.shape
    H = orig_shape[-1]
    rows = 1
    for d in orig_shape[:-1]:
        rows *= d

    x2 = x.reshape(rows, H)
    w_f32 = weight.astype(jnp.float32)
    b_f32 = bias.astype(jnp.float32) if bias is not None else None

    # Lane-dense small-H path: fold k = 128/H rows into the 128-lane dim.
    if H < _LANES and _LANES % H == 0:
        fold = _LANES // H
        if fold > 1 and rows % fold == 0 and rows >= fold:
            out = _layer_norm_folded(x2, w_f32, b_f32, rows, H, fold)
            return out.reshape(orig_shape)

    out = _layer_norm_rows(x2, w_f32, b_f32, rows, H)
    return out.reshape(orig_shape)


# ---------------------------------------------------------------------------
# Self-test
# ---------------------------------------------------------------------------
def _ref_ln(x, w, b):
    mean = jnp.mean(x, axis=-1, keepdims=True)
    var = jnp.mean((x - mean) ** 2, axis=-1, keepdims=True)
    y = (x - mean) / jnp.sqrt(var + _EPS) * w
    return y + b if b is not None else y


if __name__ == "__main__":
    key = jax.random.PRNGKey(0)
    B, T, H = 2, 8, 32

    x = jax.random.normal(key, (B, T, H), dtype=jnp.float32)

    # Deterministic parameter init, matching nn.Parameter(torch.ones/zeros(ndim))
    weight = jnp.ones((H,), dtype=jnp.float32)
    bias = jnp.zeros((H,), dtype=jnp.float32)   # bias=True case

    # bias=True  (H=32 -> folded lane-dense path)
    y = jax.block_until_ready(layer_norm(x, weight, bias))
    # bias=False (bias=None) -> bias-free folded kernel
    y_nobias = jax.block_until_ready(layer_norm(x, weight, None))

    ref = _ref_ln(x, weight, bias)
    assert jnp.allclose(y, ref, atol=1e-5, rtol=1e-5)
    assert jnp.allclose(y_nobias, ref, atol=1e-5, rtol=1e-5)  # bias is zeros here

    # Non-trivial weight/bias + row count that does not fold evenly
    # (21 rows % 4 != 0 -> exercises the regular small-H path, ragged block).
    k1, k2, k3 = jax.random.split(jax.random.PRNGKey(1), 3)
    w_r = 1.0 + 0.1 * jax.random.normal(k1, (H,), dtype=jnp.float32)
    b_r = 0.1 * jax.random.normal(k2, (H,), dtype=jnp.float32)
    x_odd = jax.random.normal(k3, (3, 7, H), dtype=jnp.float32)
    y_odd = jax.block_until_ready(layer_norm(x_odd, w_r, b_r))
    assert jnp.allclose(y_odd, _ref_ln(x_odd, w_r, b_r), atol=1e-5, rtol=1e-5)

    # Wider feature dim (regular lane-dense path, H >= 128), bias and no-bias.
    H2 = 256
    k4, k5, k6 = jax.random.split(jax.random.PRNGKey(2), 3)
    x_wide = jax.random.normal(k4, (2, 8, H2), dtype=jnp.float32)
    w_wide = 1.0 + 0.1 * jax.random.normal(k5, (H2,), dtype=jnp.float32)
    b_wide = 0.1 * jax.random.normal(k6, (H2,), dtype=jnp.float32)
    y_wide = jax.block_until_ready(layer_norm(x_wide, w_wide, b_wide))
    y_wide_nb = jax.block_until_ready(layer_norm(x_wide, w_wide, None))
    assert jnp.allclose(y_wide, _ref_ln(x_wide, w_wide, b_wide), atol=1e-5, rtol=1e-5)
    assert jnp.allclose(y_wide_nb, _ref_ln(x_wide, w_wide, None), atol=1e-5, rtol=1e-5)

    print("KERNEL_OK")
</pallas_src>

<mosaic_0001>
module attributes {stable_mosaic.version = 11 : i64} {
  func.func @_ln_kernel_folded_bias(%arg0: i32, %arg1: memref<8x128xf32, #tpu.memory_space<vmem>>, %arg2: memref<128x128xf32, #tpu.memory_space<vmem>>, %arg3: memref<1x128xf32, #tpu.memory_space<vmem>>, %arg4: memref<1x128xf32, #tpu.memory_space<vmem>>, %arg5: memref<8x128xf32, #tpu.memory_space<vmem>>) attributes {dimension_semantics = [#tpu.dimension_semantics<parallel>], iteration_bounds = array<i64: 1>, scalar_prefetch = 0 : i64, scratch_operands = 0 : i64, tpu.core_type = #tpu.core_type<tc>, window_params = [{transform_indices = @transform_0, window_bounds = array<i64: 8, 128>}, {pipeline_mode = #tpu.pipeline_mode<synchronous>, transform_indices = @transform_1, window_bounds = array<i64: 128, 128>}, {pipeline_mode = #tpu.pipeline_mode<synchronous>, transform_indices = @transform_2, window_bounds = array<i64: 1, 128>}, {pipeline_mode = #tpu.pipeline_mode<synchronous>, transform_indices = @transform_3, window_bounds = array<i64: 1, 128>}, {transform_indices = @transform_4, window_bounds = array<i64: 8, 128>}]} {
    %c0 = arith.constant 0 : index
    %c0_0 = arith.constant 0 : index
    %0 = vector.load %arg1[%c0, %c0_0] : memref<8x128xf32, #tpu.memory_space<vmem>>, vector<8x128xf32>
    %c0_1 = arith.constant 0 : index
    %c0_2 = arith.constant 0 : index
    %1 = vector.load %arg2[%c0_1, %c0_2] : memref<128x128xf32, #tpu.memory_space<vmem>>, vector<128x128xf32>
    %cst = arith.constant dense<0.000000e+00> : vector<8x128xf32>
    %2 = tpu.matmul %0, %1, %cst {dimension_numbers = #tpu.dot_dimension_numbers<[1], [0], [0], [1], [0, 0, 1, 1], [], []>} : vector<8x128xf32>, vector<128x128xf32>, vector<8x128xf32> -> vector<8x128xf32>
    %3 = arith.mulf %0, %0 : vector<8x128xf32>
    %cst_3 = arith.constant dense<0.000000e+00> : vector<8x128xf32>
    %4 = tpu.matmul %3, %1, %cst_3 {dimension_numbers = #tpu.dot_dimension_numbers<[1], [0], [0], [1], [0, 0, 1, 1], [], []>} : vector<8x128xf32>, vector<128x128xf32>, vector<8x128xf32> -> vector<8x128xf32>
    %5 = arith.mulf %2, %2 : vector<8x128xf32>
    %6 = arith.subf %4, %5 : vector<8x128xf32>
    %cst_4 = arith.constant 0.000000e+00 : f32
    %7 = vector.broadcast %cst_4 : f32 to vector<8x128xf32>
    %8 = arith.maximumf %6, %7 : vector<8x128xf32>
    %cst_5 = arith.constant 9.99999974E-6 : f32
    %9 = vector.broadcast %cst_5 : f32 to vector<8x128xf32>
    %10 = arith.addf %8, %9 : vector<8x128xf32>
    %11 = math.rsqrt %10 : vector<8x128xf32>
    %12 = arith.subf %0, %2 : vector<8x128xf32>
    %13 = arith.mulf %12, %11 : vector<8x128xf32>
    %c0_6 = arith.constant 0 : index
    %c0_7 = arith.constant 0 : index
    %14 = vector.load %arg3[%c0_6, %c0_7] : memref<1x128xf32, #tpu.memory_space<vmem>>, vector<1x128xf32>
    %15 = vector.broadcast %14 : vector<1x128xf32> to vector<8x128xf32>
    %16 = arith.mulf %13, %15 : vector<8x128xf32>
    %c0_8 = arith.constant 0 : index
    %c0_9 = arith.constant 0 : index
    %17 = vector.load %arg4[%c0_8, %c0_9] : memref<1x128xf32, #tpu.memory_space<vmem>>, vector<1x128xf32>
    %18 = vector.broadcast %17 : vector<1x128xf32> to vector<8x128xf32>
    %19 = arith.addf %16, %18 : vector<8x128xf32>
    %c0_10 = arith.constant 0 : index
    %c0_11 = arith.constant 0 : index
    %20 = vector.load %arg5[%c0_10, %c0_11] : memref<8x128xf32, #tpu.memory_space<vmem>>, vector<8x128xf32>
    tpu.vector_store %arg5[%c0_10, %c0_11], %19 {strides = array<i32>} : memref<8x128xf32, #tpu.memory_space<vmem>>, vector<8x128xf32>,
    return
  }
  func.func @transform_0(%arg0: i32) -> (i32, i32) {
    %c0_i32 = arith.constant 0 : i32
    %c0_i32_0 = arith.constant 0 : i32
    return %arg0, %c0_i32 : i32, i32
  }
  func.func @transform_1(%arg0: i32) -> (i32, i32) {
    %c0_i32 = arith.constant 0 : i32
    %c0_i32_0 = arith.constant 0 : i32
    %c0_i32_1 = arith.constant 0 : i32
    return %c0_i32, %c0_i32_0 : i32, i32
  }
  func.func @transform_2(%arg0: i32) -> (i32, i32) {
    %c0_i32 = arith.constant 0 : i32
    %c0_i32_0 = arith.constant 0 : i32
    %c0_i32_1 = arith.constant 0 : i32
    return %c0_i32, %c0_i32_0 : i32, i32
  }
  func.func @transform_3(%arg0: i32) -> (i32, i32) {
    %c0_i32 = arith.constant 0 : i32
    %c0_i32_0 = arith.constant 0 : i32
    %c0_i32_1 = arith.constant 0 : i32
    return %c0_i32, %c0_i32_0 : i32, i32
  }
  func.func @transform_4(%arg0: i32) -> (i32, i32) {
    %c0_i32 = arith.constant 0 : i32
    %c0_i32_0 = arith.constant 0 : i32
    return %arg0, %c0_i32 : i32, i32
  }
}

</mosaic_0001>

<bundles_post_ra>
// kernel: tpu_custom_call.1
= control target key start
LH: loop header
LB: loop body
LE: loop exit
PB: predicated region body
PF: predicated region fallthrough
CT: control target
= control target key end

     0   :  { %9 = vsyncpa [#allocation3], 0  ;;  %s297_s0 = inlined_call_operand.hbm [shape: f32[4,128], index: 0, kind: input, shape index: {}]   ;;  %s298_s1 = inlined_call_operand.hbm [shape: f32[128,128], index: 1, kind: input, shape index: {}]   ;;  %s299_s2 = inlined_call_operand.vmem [shape: f32[1,128], index: 2, kind: input, shape index: {}]   ;;  %s300_s3 = inlined_call_operand.vmem [shape: f32[1,128], index: 3, kind: input, shape index: {}]   ;;  %s301_s4 = inlined_call_operand.hbm [shape: f32[4,128], index: 4, kind: output, shape index: {}]  }
   0x1   :  { %10 = vsyncpa [#allocation6], 0 }
   0x2   :  { %11 = vsyncpa [#allocation4], 0 }
   0x3   :  { %15 = vsyncadd [#allocation3], 64  ;;  %s16_s17 = sshll.u32 %s297_s0, 4  ;;  %s244_s18 = smov [#allocation2]   ;;  %s17_s17 = int_to_ptr.hbm [resolvable:$true] %s16_s17 }
   0x4   :  { %s18_s19 = sshll.u32 %s244_s18, 4  ;;  %s29_s22 = sshll.u32 %s298_s1, 4  ;;  %s19_s19 = int_to_ptr.vmem [resolvable:$true] %s18_s19  ;;  %s30_s22 = int_to_ptr.hbm [resolvable:$true] %s29_s22 }
   0x5   :  { %s245_s23 = smov 64   ;;  %s246_s24 = smov 4  }
   0x6   :  { %24 = dma.hbm_to_vmem [thread:$0]  %s17_s17, 64, %s19_s19, [#allocation3], %s245_s23, %s245_s23, %s246_s24  }
   0x7   :  { %s247_s25 = smov [#allocation5]   ;;  %s248_s27 = smov 128  }
   0x8   :  { %s31_s26 = sshll.u32 %s247_s25, 4  ;;  %s249_s0 = smov 8   ;;  %s32_s26 = int_to_ptr.vmem [resolvable:$true] %s31_s26 }
   0x9   :  { %37 = dma.hbm_to_vmem [thread:$0]  %s30_s22, 2048, %s32_s26, [#allocation6], %s248_s27, %s248_s27, %s249_s0  }
   0xa   :  { %238 = dma.done.wait [#allocation3], 128  }
   0xb   :  { %239 = vsyncadd [#allocation3], 4294967168 }
   0xc   :  { %240 = dma.done.wait [#allocation6], 2048  }
   0xd   :  { %241 = vsyncadd [#allocation6], 4294965248  ;;  %v66_v0 = vld [vmem:[#allocation5 + $0x78] sm:$0xff]  ;;  %v65_v1 = vld [vmem:[#allocation5 + $0x70] sm:$0xff] }
   0xe   :  { %67 = vmatpush.msra.mxu0 %v66_v0  ;;  %88 = vmatpush.msra.mxu1 %v66_v0  ;;  %v64_v2 = vld [vmem:[#allocation5 + $0x68] sm:$0xff]  ;;  %v63_v3 = vld [vmem:[#allocation5 + $0x60] sm:$0xff]  ;;  %v62_v4 = vld [vmem:[#allocation5 + $0x58] sm:$0xff] }
   0xf   :  { %v61_v5 = vld [vmem:[#allocation5 + $0x50] sm:$0xff]  ;;  %v60_v6 = vld [vmem:[#allocation5 + $0x48] sm:$0xff]  ;;  %v59_v7 = vld [vmem:[#allocation5 + $0x40] sm:$0xff] }
  0x10   :  { %68 = vmatpush.msra.mxu0 %v65_v1  ;;  %89 = vmatpush.msra.mxu1 %v65_v1  ;;  %v58_v8 = vld [vmem:[#allocation5 + $0x38] sm:$0xff]  ;;  %v57_v9 = vld [vmem:[#allocation5 + $0x30] sm:$0xff]  ;;  %v56_v10 = vld [vmem:[#allocation5 + $0x28] sm:$0xff] }
  0x11   :  { %v55_v11 = vld [vmem:[#allocation5 + $0x20] sm:$0xff]  ;;  %v54_v12 = vld [vmem:[#allocation5 + $0x18] sm:$0xff]  ;;  %v53_v13 = vld [vmem:[#allocation5 + $0x10] sm:$0xff] }
  0x12   :  { %69 = vmatpush.msra.mxu0 %v64_v2  ;;  %90 = vmatpush.msra.mxu1 %v64_v2  ;;  %v50_v14 = vld [vmem:[#allocation2] sm:$0xff]  ;;  %v52_v15 = vld [vmem:[#allocation5 + $0x8] sm:$0xff]  ;;  %v51_v16 = vld [vmem:[#allocation5] sm:$0xff] }
  0x13   :  { %v87_v17 = vmul.f32 %v50_v14, %v50_v14  ;;  %v162_v31 = vld [vmem:[%s299_s2] ss:$0 sm:$0xff] }
  0x14   :  { %70 = vmatpush.msra.mxu0 %v63_v3  ;;  %91 = vmatpush.msra.mxu1 %v63_v3  ;;  %v163_v34 = vld [vmem:[%s300_s3] ss:$0 sm:$0xff] }
  0x16   :  { %71 = vmatpush.msra.mxu0 %v62_v4  ;;  %92 = vmatpush.msra.mxu1 %v62_v4 }
  0x18   :  { %72 = vmatpush.msra.mxu0 %v61_v5  ;;  %93 = vmatpush.msra.mxu1 %v61_v5 }
  0x1a   :  { %73 = vmatpush.msra.mxu0 %v60_v6  ;;  %94 = vmatpush.msra.mxu1 %v60_v6 }
  0x1c   :  { %74 = vmatpush.msra.mxu0 %v59_v7  ;;  %95 = vmatpush.msra.mxu1 %v59_v7 }
  0x1e   :  { %75 = vmatpush.msra.mxu0 %v58_v8  ;;  %96 = vmatpush.msra.mxu1 %v58_v8 }
  0x20   :  { %76 = vmatpush.msra.mxu0 %v57_v9  ;;  %97 = vmatpush.msra.mxu1 %v57_v9 }
  0x22   :  { %77 = vmatpush.msra.mxu0 %v56_v10  ;;  %98 = vmatpush.msra.mxu1 %v56_v10 }
  0x24   :  { %78 = vmatpush.msra.mxu0 %v55_v11  ;;  %99 = vmatpush.msra.mxu1 %v55_v11 }
  0x26   :  { %79 = vmatpush.msra.mxu0 %v54_v12  ;;  %100 = vmatpush.msra.mxu1 %v54_v12 }
  0x28   :  { %80 = vmatpush.msra.mxu0 %v53_v13  ;;  %101 = vmatpush.msra.mxu1 %v53_v13 }
  0x2a   :  { %81 = vmatpush.msra.mxu0 %v52_v15  ;;  %102 = vmatpush.msra.mxu1 %v52_v15 }
  0x2c   :  { %82 = vmatpush.msra.mxu0 %v51_v16  ;;  %103 = vmatpush.msra.mxu1 %v51_v16 }
  0x2d   :  { %83 = vmatmul.f32.vlgmr.msra.gmra.mxu0 %v50_v14  ;;  %104 = vmatmul.f32.vlgmr.msra.gmra.mxu1 %v87_v17 }
  0xaa   :  { %v84_v18 = vpop.f32.mrf.mxu0  ;;  %v105_v19 = vpop.f32.mrf.mxu1 }
  0xab   :  { %v108_v20 = vmul.f32 %v84_v18, %v84_v18  ;;  %v122_v30 = vsub.f32 %v50_v14, %v84_v18 }
  0xad   :  { %v109_v21 = vsub.f32 %v105_v19, %v108_v20 }
  0xaf   :  { %v110_v22 = vmax.f32 %v109_v21, 0.0 }
  0xb1   :  { %v111_v23 = vadd.f32 1e-05, %v110_v22 }
  0xb3   :  { %164 = vrsqrt.f32 %v111_v23  ;;  %vm118_vm1 = vweird.f32 %v111_v23 }
  0xb9   :  { %v165_v24 = vpop.eup %164 }
  0xba   :  { %v113_v25 = vmul.f32 %v165_v24, %v111_v23  ;;  %vm119_vm0 = vweird.f32 %v165_v24 }
  0xbb   :  { %vm120_vm2 = vmor %vm118_vm1, %vm119_vm0 }
  0xbc   :  { %v114_v26 = vmul.f32 %v165_v24, %v113_v25 }
  0xbe   :  { %v115_v27 = vmul.f32 0.5, %v114_v26 }
  0xc0   :  { %v116_v28 = vsub.f32 1.5, %v115_v27 }
  0xc2   :  { %v117_v29 = vmul.f32 %v165_v24, %v116_v28 }
  0xc4   :  { %v121_v32 = vsel %vm120_vm2, %v165_v24, %v117_v29 }
  0xc5   :  { %v123_v33 = vmul.f32 %v122_v30, %v121_v32 }
  0xc7   :  { %v128_v35 = vmul.f32 %v162_v31, %v123_v33 }
  0xc9   :  { %v133_v36 = vadd.f32 %v163_v34, %v128_v35 }
  0xcb   :  { %134 = vst [vmem:[#allocation7] sm:$0xff] %v133_v36 }
  0xcc   :  { %138 = vsyncadd [#allocation4], 64  ;;  %s141_s7 = sshll.u32 %s301_s4, 4  ;;  %s250_s8 = smov [#allocation7]   ;;  %s142_s7 = int_to_ptr.hbm [resolvable:$true] %s141_s7 }
  0xcd   :  { %s139_s9 = sshll.u32 %s250_s8, 4  ;;  %s140_s9 = int_to_ptr.vmem [resolvable:$true] %s139_s9 }
  0xce   :  { %147 = dma.vmem_to_hbm [thread:$0]  %s140_s9, 64, %s142_s7, [#allocation4], %s245_s23, %s245_s23, %s246_s24  }
  0xcf   :  { %242 = dma.done.wait [#allocation4], 128  }
  0xd0   :  { %243 = vsyncadd [#allocation4], 4294967168 }
  0xd1   :  { %152 = vsyncpa [#allocation3], 1 }
  0xd2   :  { %153 = vsyncpa [#allocation6], 1 }
  0xd3   :  { %154 = vsyncpa [#allocation4], 1 }

</bundles_post_ra>
